<compile_context>
chip_gen: v7x
topology: tpu7x:2x2x1
jax: 0.10.0
libtpu: 0.0.40
codegen_flags: <defaults>
</compile_context>

<pallas_src>
import functools

import jax
import jax.numpy as jnp
from jax.experimental import pallas as pl
from jax.experimental.pallas import tpu as pltpu

KH, KW = 2, 2  # kernel_size=(2, 2), stride=(1, 1)


def _causal_conv_kernel(x_ref, w_ref, b_ref, wmask_ref, o_ref, *, width):
    # x_ref    : (1, M, Cin)     flattened NHWC image (M = H*W), compute dtype
    # w_ref    : (4, Cin, Cout)  per-tap weights, order [W11, W01, W10, W00]
    # b_ref    : (1, Cout)       f32 bias
    # wmask_ref: (M, 1)          f32; 0.0 where flat index has w == 0, else 1.0
    # o_ref    : (1, M, Cout)    unpadded output
    f32 = jnp.float32
    x = x_ref[0]                                             # (M, Cin)

    # Four per-tap MXU matmuls sharing the same (un-shifted) LHS, f32 accumulation.
    p11 = jnp.dot(x, w_ref[0], preferred_element_type=f32)   # tap (kh=1, kw=1)
    p01 = jnp.dot(x, w_ref[1], preferred_element_type=f32)   # tap (kh=0, kw=1)
    p10 = jnp.dot(x, w_ref[2], preferred_element_type=f32)   # tap (kh=1, kw=0)
    p00 = jnp.dot(x, w_ref[3], preferred_element_type=f32)   # tap (kh=1->0, kw=0)

    m, cout = p11.shape

    def shift_h(p):
        # Shift down by one image row == flat shift by `width` rows; the inserted
        # zero rows implement the causal top pad.  Placement offset is `width`
        # (a multiple of 8 for typical W), so this is sublane-tile aligned.
        zeros = jnp.zeros((width, cout), f32)
        return jnp.concatenate([zeros, p[: m - width]], axis=0)

    a = p11 + shift_h(p01)        # contributions landing in the same column (kw = 1)
    bgrp = p10 + shift_h(p00)     # kw = 0 taps, before the one-column right shift

    # Shift right by one column == flat shift by one row; row-wrap positions
    # (w == 0) are zeroed by the precomputed mask (implements the causal left pad).
    zrow = jnp.zeros((1, cout), f32)
    b_shift = jnp.concatenate([zrow, bgrp[: m - 1]], axis=0) * wmask_ref[...]

    out = a + b_shift + b_ref[...]
    o_ref[0] = out.astype(o_ref.dtype)


def down_rightward_conv(x_nchw, v, g, b, *, compute_dtype=jnp.bfloat16):
    """Forward pass of down_rightward_conv (left_pad_output=False).

    x_nchw: (N, Cin, H, W)   v: (Cout, Cin, KH, KW)   g: (Cout,)   b: (Cout,)
    Returns (N, Cout, H, W) in x_nchw.dtype.
    """
    N, Cin, H, W = x_nchw.shape
    Cout = v.shape[0]
    M = H * W

    # weight_norm with dim=0: w = g * v / ||v|| over dims (1, 2, 3)   (f32)
    vnorm = jnp.sqrt(
        jnp.sum(v.astype(jnp.float32) ** 2, axis=(1, 2, 3), keepdims=True)
    )
    w_oikk = g.reshape(Cout, 1, 1, 1).astype(jnp.float32) * v.astype(jnp.float32) / vnorm
    w_hwio = jnp.transpose(w_oikk, (2, 3, 1, 0))             # (KH, KW, Cin, Cout)
    # Per-tap (Cin, Cout) matrices, stacked in the order the kernel consumes them.
    w_taps = jnp.stack(
        [w_hwio[1, 1], w_hwio[0, 1], w_hwio[1, 0], w_hwio[0, 0]], axis=0
    ).astype(compute_dtype)                                   # (4, Cin, Cout)
    b2 = b.astype(jnp.float32).reshape(1, Cout)

    # Single fused input pass: NCHW -> flat NHWC (N, H*W, Cin), cast to compute dtype.
    x_flat = (
        jnp.transpose(x_nchw, (0, 2, 3, 1)).reshape(N, M, Cin).astype(compute_dtype)
    )

    # Column-0 mask for the in-kernel flat right-shift (tiny, computed once).
    wmask = (jnp.arange(M, dtype=jnp.int32) % W != 0).astype(jnp.float32).reshape(M, 1)

    kernel = functools.partial(_causal_conv_kernel, width=W)
    out_flat = pl.pallas_call(
        kernel,
        out_shape=jax.ShapeDtypeStruct((N, M, Cout), x_nchw.dtype),
        grid=(N,),
        in_specs=[
            pl.BlockSpec((1, M, Cin), lambda n: (n, 0, 0)),      # one image per step
            pl.BlockSpec((4, Cin, Cout), lambda n: (0, 0, 0)),   # weights (constant)
            pl.BlockSpec((1, Cout), lambda n: (0, 0)),           # bias (constant)
            pl.BlockSpec((M, 1), lambda n: (0, 0)),              # column-0 mask
        ],
        out_specs=pl.BlockSpec((1, M, Cout), lambda n: (n, 0, 0)),
        compiler_params=pltpu.CompilerParams(
            dimension_semantics=("parallel",),   # batch steps split across TCs (v7x)
            vmem_limit_bytes=32 * 1024 * 1024,
        ),
    )(x_flat, w_taps, b2, wmask)

    out_nhwc = out_flat.reshape(N, H, W, Cout)
    return jnp.transpose(out_nhwc, (0, 3, 1, 2))               # back to NCHW


def _reference(x_nchw, v, g, b):
    # Pure-JAX f32 reference: weight-norm + causal pad + conv via lax.conv.
    Cout = v.shape[0]
    vnorm = jnp.sqrt(
        jnp.sum(v.astype(jnp.float32) ** 2, axis=(1, 2, 3), keepdims=True)
    )
    w_oikk = g.reshape(Cout, 1, 1, 1) * v / vnorm
    w_hwio = jnp.transpose(w_oikk, (2, 3, 1, 0))
    x_nhwc = jnp.transpose(x_nchw, (0, 2, 3, 1))
    x_pad = jnp.pad(x_nhwc, ((0, 0), (KH - 1, 0), (KW - 1, 0), (0, 0)))
    out = jax.lax.conv_general_dilated(
        x_pad, w_hwio, window_strides=(1, 1), padding="VALID",
        dimension_numbers=("NHWC", "HWIO", "NHWC"),
    ) + b.reshape(1, 1, 1, Cout)
    return jnp.transpose(out, (0, 3, 1, 2))


if __name__ == "__main__":
    # Small deterministic setup: batch=2, in_channels=4, out_channels=8, 16x16.
    N, Cin, Cout, H, W = 2, 4, 8, 16, 16
    key = jax.random.PRNGKey(0)
    kx, kv, kb = jax.random.split(key, 3)

    x = jax.random.normal(kx, (N, Cin, H, W), dtype=jnp.float32)
    v = jax.random.normal(kv, (Cout, Cin, KH, KW), dtype=jnp.float32) * 0.1
    # PyTorch weight_norm init sets g = ||v|| (per output channel).
    g = jnp.sqrt(jnp.sum(v ** 2, axis=(1, 2, 3)))
    b = jax.random.normal(kb, (Cout,), dtype=jnp.float32) * 0.01

    ref = _reference(x, v, g, b)

    # f32 compute path: tight check vs the reference.
    out_f32 = down_rightward_conv(x, v, g, b, compute_dtype=jnp.float32)
    jax.block_until_ready(out_f32)
    assert out_f32.shape == (N, Cout, H, W)
    assert jnp.allclose(out_f32, ref, atol=1e-4, rtol=1e-4), "f32 mismatch vs reference"

    # Default bf16 compute path (f32 accumulation): looser tolerance.
    out_bf16 = down_rightward_conv(x, v, g, b)
    jax.block_until_ready(out_bf16)
    assert out_bf16.shape == (N, Cout, H, W)
    assert jnp.allclose(out_bf16, ref, atol=2e-2, rtol=2e-2), "bf16 mismatch vs reference"

    print("KERNEL_OK")
</pallas_src>

<mosaic_0001>
module attributes {stable_mosaic.version = 11 : i64} {
  func.func @_causal_conv_kernel(%arg0: i32, %arg1: memref<1x256x4xf32, #tpu.memory_space<vmem>>, %arg2: memref<4x4x8xf32, #tpu.memory_space<vmem>>, %arg3: memref<1x8xf32, #tpu.memory_space<vmem>>, %arg4: memref<256x1xf32, #tpu.memory_space<vmem>>, %arg5: memref<1x256x8xf32, #tpu.memory_space<vmem>>) attributes {dimension_semantics = [#tpu.dimension_semantics<parallel>], iteration_bounds = array<i64: 2>, scalar_prefetch = 0 : i64, scratch_operands = 0 : i64, tpu.core_type = #tpu.core_type<tc>, window_params = [{transform_indices = @transform_0, window_bounds = array<i64: 1, 256, 4>}, {pipeline_mode = #tpu.pipeline_mode<synchronous>, transform_indices = @transform_1, window_bounds = array<i64: 4, 4, 8>}, {pipeline_mode = #tpu.pipeline_mode<synchronous>, transform_indices = @transform_2, window_bounds = array<i64: 1, 8>}, {pipeline_mode = #tpu.pipeline_mode<synchronous>, transform_indices = @transform_3, window_bounds = array<i64: 256, 1>}, {transform_indices = @transform_4, window_bounds = array<i64: 1, 256, 8>}]} {
    %c0 = arith.constant 0 : index
    %c0_0 = arith.constant 0 : index
    %c0_1 = arith.constant 0 : index
    %0 = vector.load %arg1[%c0, %c0_0, %c0_1] : memref<1x256x4xf32, #tpu.memory_space<vmem>>, vector<1x256x4xf32>
    %1 = vector.shape_cast %0 : vector<1x256x4xf32> to vector<256x4xf32>
    %c0_2 = arith.constant 0 : index
    %c0_3 = arith.constant 0 : index
    %c0_4 = arith.constant 0 : index
    %2 = vector.load %arg2[%c0_2, %c0_3, %c0_4] : memref<4x4x8xf32, #tpu.memory_space<vmem>>, vector<1x4x8xf32>
    %3 = vector.shape_cast %2 : vector<1x4x8xf32> to vector<4x8xf32>
    %cst = arith.constant dense<0.000000e+00> : vector<256x8xf32>
    %4 = tpu.matmul %1, %3, %cst {dimension_numbers = #tpu.dot_dimension_numbers<[1], [0], [0], [1], [0, 0, 1, 1], [], []>} : vector<256x4xf32>, vector<4x8xf32>, vector<256x8xf32> -> vector<256x8xf32>
    %c1 = arith.constant 1 : index
    %c0_5 = arith.constant 0 : index
    %c0_6 = arith.constant 0 : index
    %5 = vector.load %arg2[%c1, %c0_5, %c0_6] : memref<4x4x8xf32, #tpu.memory_space<vmem>>, vector<1x4x8xf32>
    %6 = vector.shape_cast %5 : vector<1x4x8xf32> to vector<4x8xf32>
    %cst_7 = arith.constant dense<0.000000e+00> : vector<256x8xf32>
    %7 = tpu.matmul %1, %6, %cst_7 {dimension_numbers = #tpu.dot_dimension_numbers<[1], [0], [0], [1], [0, 0, 1, 1], [], []>} : vector<256x4xf32>, vector<4x8xf32>, vector<256x8xf32> -> vector<256x8xf32>
    %c2 = arith.constant 2 : index
    %c0_8 = arith.constant 0 : index
    %c0_9 = arith.constant 0 : index
    %8 = vector.load %arg2[%c2, %c0_8, %c0_9] : memref<4x4x8xf32, #tpu.memory_space<vmem>>, vector<1x4x8xf32>
    %9 = vector.shape_cast %8 : vector<1x4x8xf32> to vector<4x8xf32>
    %cst_10 = arith.constant dense<0.000000e+00> : vector<256x8xf32>
    %10 = tpu.matmul %1, %9, %cst_10 {dimension_numbers = #tpu.dot_dimension_numbers<[1], [0], [0], [1], [0, 0, 1, 1], [], []>} : vector<256x4xf32>, vector<4x8xf32>, vector<256x8xf32> -> vector<256x8xf32>
    %c3 = arith.constant 3 : index
    %c0_11 = arith.constant 0 : index
    %c0_12 = arith.constant 0 : index
    %11 = vector.load %arg2[%c3, %c0_11, %c0_12] : memref<4x4x8xf32, #tpu.memory_space<vmem>>, vector<1x4x8xf32>
    %12 = vector.shape_cast %11 : vector<1x4x8xf32> to vector<4x8xf32>
    %cst_13 = arith.constant dense<0.000000e+00> : vector<256x8xf32>
    %13 = tpu.matmul %1, %12, %cst_13 {dimension_numbers = #tpu.dot_dimension_numbers<[1], [0], [0], [1], [0, 0, 1, 1], [], []>} : vector<256x4xf32>, vector<4x8xf32>, vector<256x8xf32> -> vector<256x8xf32>
    %cst_14 = arith.constant 0.000000e+00 : f32
    %14 = vector.broadcast %cst_14 : f32 to vector<16x8xf32>
    %15 = vector.extract_strided_slice %7 {offsets = [0, 0], sizes = [240, 8], strides = [1, 1]} : vector<256x8xf32> to vector<240x8xf32>
    %16 = tpu.concatenate %14, %15 in 0 : vector<16x8xf32>, vector<240x8xf32> -> vector<256x8xf32>
    %17 = arith.addf %4, %16 : vector<256x8xf32>
    %cst_15 = arith.constant 0.000000e+00 : f32
    %18 = vector.broadcast %cst_15 : f32 to vector<16x8xf32>
    %19 = vector.extract_strided_slice %13 {offsets = [0, 0], sizes = [240, 8], strides = [1, 1]} : vector<256x8xf32> to vector<240x8xf32>
    %20 = tpu.concatenate %18, %19 in 0 : vector<16x8xf32>, vector<240x8xf32> -> vector<256x8xf32>
    %21 = arith.addf %10, %20 : vector<256x8xf32>
    %cst_16 = arith.constant 0.000000e+00 : f32
    %22 = vector.broadcast %cst_16 : f32 to vector<1x8xf32>
    %23 = vector.extract_strided_slice %21 {offsets = [0, 0], sizes = [255, 8], strides = [1, 1]} : vector<256x8xf32> to vector<255x8xf32>
    %24 = tpu.concatenate %22, %23 in 0 : vector<1x8xf32>, vector<255x8xf32> -> vector<256x8xf32>
    %c0_17 = arith.constant 0 : index
    %c0_18 = arith.constant 0 : index
    %25 = vector.load %arg4[%c0_17, %c0_18] : memref<256x1xf32, #tpu.memory_space<vmem>>, vector<256x1xf32>
    %26 = vector.broadcast %25 : vector<256x1xf32> to vector<256x8xf32>
    %27 = arith.mulf %24, %26 : vector<256x8xf32>
    %28 = arith.addf %17, %27 : vector<256x8xf32>
    %c0_19 = arith.constant 0 : index
    %c0_20 = arith.constant 0 : index
    %29 = vector.load %arg3[%c0_19, %c0_20] : memref<1x8xf32, #tpu.memory_space<vmem>>, vector<1x8xf32>
    %30 = vector.broadcast %29 : vector<1x8xf32> to vector<256x8xf32>
    %31 = arith.addf %28, %30 : vector<256x8xf32>
    %c0_21 = arith.constant 0 : index
    %c0_22 = arith.constant 0 : index
    %c0_23 = arith.constant 0 : index
    %32 = vector.load %arg5[%c0_21, %c0_22, %c0_23] : memref<1x256x8xf32, #tpu.memory_space<vmem>>, vector<1x256x8xf32>
    %33 = vector.shape_cast %32 : vector<1x256x8xf32> to vector<256x8xf32>
    %34 = vector.shape_cast %31 : vector<256x8xf32> to vector<1x256x8xf32>
    tpu.vector_store %arg5[%c0_21, %c0_22, %c0_23], %34 {strides = array<i32>} : memref<1x256x8xf32, #tpu.memory_space<vmem>>, vector<1x256x8xf32>,
    return
  }
  func.func @transform_0(%arg0: i32) -> (i32, i32, i32) {
    %c0_i32 = arith.constant 0 : i32
    %c0_i32_0 = arith.constant 0 : i32
    %c0_i32_1 = arith.constant 0 : i32
    return %arg0, %c0_i32, %c0_i32_0 : i32, i32, i32
  }
  func.func @transform_1(%arg0: i32) -> (i32, i32, i32) {
    %c0_i32 = arith.constant 0 : i32
    %c0_i32_0 = arith.constant 0 : i32
    %c0_i32_1 = arith.constant 0 : i32
    %c0_i32_2 = arith.constant 0 : i32
    return %c0_i32, %c0_i32_0, %c0_i32_1 : i32, i32, i32
  }
  func.func @transform_2(%arg0: i32) -> (i32, i32) {
    %c0_i32 = arith.constant 0 : i32
    %c0_i32_0 = arith.constant 0 : i32
    %c0_i32_1 = arith.constant 0 : i32
    return %c0_i32, %c0_i32_0 : i32, i32
  }
  func.func @transform_3(%arg0: i32) -> (i32, i32) {
    %c0_i32 = arith.constant 0 : i32
    %c0_i32_0 = arith.constant 0 : i32
    %c0_i32_1 = arith.constant 0 : i32
    return %c0_i32, %c0_i32_0 : i32, i32
  }
  func.func @transform_4(%arg0: i32) -> (i32, i32, i32) {
    %c0_i32 = arith.constant 0 : i32
    %c0_i32_0 = arith.constant 0 : i32
    %c0_i32_1 = arith.constant 0 : i32
    return %arg0, %c0_i32, %c0_i32_0 : i32, i32, i32
  }
}

</mosaic_0001>

<bundles_post_ra>
// kernel: tpu_custom_call.1
= control target key start
LH: loop header
LB: loop body
LE: loop exit
PB: predicated region body
PF: predicated region fallthrough
CT: control target
= control target key end

     0   :  { %s2341_s15 = smov 0   ;;  %s3024_s0 = inlined_call_operand.vmem [shape: f32[2,256,4], index: 0, kind: input, shape index: {}]   ;;  %s3025_s1 = inlined_call_operand.vmem [shape: f32[4,4,8], index: 1, kind: input, shape index: {}]   ;;  %s3026_s2 = inlined_call_operand.vmem [shape: f32[1,8], index: 2, kind: input, shape index: {}]   ;;  %s3027_s3 = inlined_call_operand.vmem [shape: f32[256,1], index: 3, kind: input, shape index: {}]   ;;  %s3028_s4 = inlined_call_operand.vmem [shape: f32[2,256,8], index: 4, kind: output, shape index: {}]  }
   0x1 LB: > { %s1755_s16 = sadd.s32 4294967295, %s2313_s15   ;;  %p1759_p0 = scmp.ge.s32.totalorder %s2313_s15, 1  ;;  %s2313_s15 = sphi %s2341_s15, %s14_s15  }
   0x2   : > { %p162_p1 = scmp.lt.s32.totalorder %s2313_s15, 3 }
   0x4   : > { %p163_p2 = pnand %p1759_p0, %p162_p1 }
   0x5   : > { %vm330_vm0 = vcmask (!%p163_p2), 1043456   ;;  %v1799_v0 = vld [vmem:[%s3025_s1 + $0xc] sm:$0xf] (!%p163_p2)  ;;  %v1764_v1 = vld [vmem:[%s3025_s1 + $0x4] sm:$0xf] (!%p163_p2)  ;;  %p188_p3 = scmp.lt.s32.totalorder (!%p163_p2), %s1755_s16, 1 }
   0x6   : > { %166 = sbr.rel (%p163_p2) target bundleno = 365 (0x16d), region = 36  ;;  %2086 = vmatprep.subr.msk.mxu1 (!%p163_p2), %vm330_vm0, %v1799_v0  ;;  %2036 = vmatprep.subr.msk.mxu0 (!%p163_p2), %vm330_vm0, %v1764_v1  ;;  %v1798_v2 = vld [vmem:[%s3025_s1 + $0x8] sm:$0xf] (!%p163_p2)  ;;  %v230_v3 = vld [vmem:[%s3025_s1] sm:$0xf] (!%p163_p2)  ;;  %v1374_v4 = vld [vmem:[%s3027_s3 + $0x10] sm:$0xff] (!%p163_p2) }
   0x7   : > { %2087 = vmatpush3.msk.msra.mxu1 (!%p163_p2), %vm330_vm0, %v1799_v0  ;;  %2037 = vmatpush3.msk.msra.mxu0 (!%p163_p2), %vm330_vm0, %v1764_v1  ;;  %v1372_v5 = vld [vmem:[%s3027_s3] sm:$0xff] (!%p163_p2)  ;;  %vm233_vm1 = vcmask (!%p163_p2), 31744   ;;  %v2315_v6 = vmov (!%p163_p2), 0   ;;  %v1375_v10 = vld [vmem:[%s3027_s3 + $0x18] sm:$0xff] (!%p163_p2)  ;;  %v1373_v11 = vld [vmem:[%s3027_s3 + $0x8] sm:$0xff] (!%p163_p2)  ;;  %vm1275_vm2 = vcmask (!%p163_p2), 1040384  }
   0x8   : > { %2186 = vmatprep.subr.msk.mxu1 (!%p163_p2), %vm330_vm0, %v1798_v2  ;;  %2136 = vmatprep.subr.msk.mxu0 (!%p163_p2), %vm330_vm0, %v230_v3  ;;  %v1377_v14 = vld [vmem:[%s3027_s3 + $0x28] sm:$0xff] (!%p163_p2)  ;;  %v1376_v15 = vld [vmem:[%s3027_s3 + $0x20] sm:$0xff] (!%p163_p2)  ;;  %v1379_v18 = vld [vmem:[%s3027_s3 + $0x38] sm:$0xff] (!%p163_p2)  ;;  %vm1667_vm3 = vcmask (!%p163_p2), 64512  }
   0x9   : > { %2306 = vset.pattern.permute.xlu1 (!%p163_p2), %v2315_v6  ;;  %2305 = vset.pattern.permute.xlu0 (!%p163_p2), %v2315_v6  ;;  %v1378_v19 = vld [vmem:[%s3027_s3 + $0x30] sm:$0xff] (!%p163_p2)  ;;  %v1381_v22 = vld [vmem:[%s3027_s3 + $0x48] sm:$0xff] (!%p163_p2)  ;;  %v1380_v23 = vld [vmem:[%s3027_s3 + $0x40] sm:$0xff] (!%p163_p2) }
   0xa   : > { %1416 = vperm.xlu1 (!%p163_p2), %2306, %v1374_v4   ;;  %1406 = vperm.xlu0 (!%p163_p2), %2305, %v1372_v5   ;;  %v1383_v26 = vld [vmem:[%s3027_s3 + $0x58] sm:$0xff] (!%p163_p2)  ;;  %v1382_v27 = vld [vmem:[%s3027_s3 + $0x50] sm:$0xff] (!%p163_p2)  ;;  %v1385_v30 = vld [vmem:[%s3027_s3 + $0x68] sm:$0xff] (!%p163_p2) }
   0xb   : > { %v1384_v31 = vld [vmem:[%s3027_s3 + $0x60] sm:$0xff] (!%p163_p2)  ;;  %v1387_v34 = vld [vmem:[%s3027_s3 + $0x78] sm:$0xff] (!%p163_p2)  ;;  %v1386_v35 = vld [vmem:[%s3027_s3 + $0x70] sm:$0xff] (!%p163_p2) }
   0xc   : > { %v1389_v38 = vld [vmem:[%s3027_s3 + $0x88] sm:$0xff] (!%p163_p2)  ;;  %v1388_v39 = vld [vmem:[%s3027_s3 + $0x80] sm:$0xff] (!%p163_p2)  ;;  %v1391_v42 = vld [vmem:[%s3027_s3 + $0x98] sm:$0xff] (!%p163_p2) }
   0xd   : > { %s3030_s16 = smov (!%p188_p3, %s1755_s16), 1  ;;  %v1390_v43 = vld [vmem:[%s3027_s3 + $0x90] sm:$0xff]  ;;  %v1393_v46 = vld [vmem:[%s3027_s3 + $0xa8] sm:$0xff]  ;;  %v1392_v47 = vld [vmem:[%s3027_s3 + $0xa0] sm:$0xff] }
   0xe   : > { %s1902_s29 = sshll.u32 %s3030_s16, 8  ;;  %1421 = vperm.xlu1 %2306, %v1375_v10   ;;  %1411 = vperm.xlu0 %2305, %v1373_v11   ;;  %v1395_v50 = vld [vmem:[%s3027_s3 + $0xb8] sm:$0xff]  ;;  %v1394_v51 = vld [vmem:[%s3027_s3 + $0xb0] sm:$0xff]  ;;  %v1397_v54 = vld [vmem:[%s3027_s3 + $0xc8] sm:$0xff] }
   0xf   : > { %s2381_s6 = scalar_lea.vmem %s3024_s0, %s1902_s29  ;;  %v1396_v55 = vld [vmem:[%s3027_s3 + $0xc0] sm:$0xff]  ;;  %v1399_v58 = vld [vmem:[%s3027_s3 + $0xd8] sm:$0xff]  ;;  %v1398_v59 = vld [vmem:[%s3027_s3 + $0xd0] sm:$0xff]  ;;  %s2861_s28 = scalar_lea.vmem %s3028_s4, %s1902_s29 }
  0x10   : > { %v2384_v7 = vld [vmem:[%s2381_s6] sm:$0xff]  ;;  %v2387_v8 = vld [vmem:[%s2381_s6 + $0x8] sm:$0xff]  ;;  %v2390_v9 = vld [vmem:[%s2381_s6 + $0x10] sm:$0xff] }
  0x11   : > { %2038 = vmatprep.mubr.msk.f32.mxu0 %vm233_vm1, %v2384_v7  ;;  %2088 = vmatprep.mubr.msk.f32.mxu1 %vm233_vm1, %v2384_v7  ;;  %v2410_v12 = vld [vmem:[%s2381_s6 + $0x18] sm:$0xff]  ;;  %v2416_v13 = vld [vmem:[%s2381_s6 + $0x20] sm:$0xff]  ;;  %v2433_v16 = vld [vmem:[%s2381_s6 + $0x28] sm:$0xff] }
  0x12   : > { %2039 = vmatmul.mubr.msk.f32.vlgmr.msra.gmra.mrb[0].mxu0 %vm233_vm1, %v2387_v8  ;;  %2089 = vmatmul.mubr.msk.f32.vlgmr.msra.gmra.mrb[0].mxu1 %vm233_vm1, %v2387_v8  ;;  %v2436_v17 = vld [vmem:[%s2381_s6 + $0x30] sm:$0xff]  ;;  %v2453_v20 = vld [vmem:[%s2381_s6 + $0x38] sm:$0xff]  ;;  %v2456_v21 = vld [vmem:[%s2381_s6 + $0x40] sm:$0xff] }
  0x13   : > { %2187 = vmatpush3.msk.msra.mxu1 %vm330_vm0, %v1798_v2  ;;  %2041 = vmatprep.mubr.msk.f32.mxu0 %vm233_vm1, %v2390_v9  ;;  %v2473_v24 = vld [vmem:[%s2381_s6 + $0x48] sm:$0xff]  ;;  %v2476_v25 = vld [vmem:[%s2381_s6 + $0x50] sm:$0xff]  ;;  %v2493_v28 = vld [vmem:[%s2381_s6 + $0x58] sm:$0xff] }
  0x14   : > { %2091 = vmatprep.mubr.msk.f32.mxu1 %vm233_vm1, %v2390_v9  ;;  %2137 = vmatpush3.msk.msra.mxu0 %vm330_vm0, %v230_v3  ;;  %v2496_v29 = vld [vmem:[%s2381_s6 + $0x60] sm:$0xff]  ;;  %v2513_v32 = vld [vmem:[%s2381_s6 + $0x68] sm:$0xff]  ;;  %v2516_v33 = vld [vmem:[%s2381_s6 + $0x70] sm:$0xff] }
  0x15   : > { %1431 = vperm.xlu1 %2306, %v1377_v14   ;;  %1426 = vperm.xlu0 %2305, %v1376_v15   ;;  %v2533_v36 = vld [vmem:[%s2381_s6 + $0x78] sm:$0xff]  ;;  %v2536_v37 = vld [vmem:[%s2381_s6 + $0x80] sm:$0xff]  ;;  %v2553_v40 = vld [vmem:[%s2381_s6 + $0x88] sm:$0xff] }
  0x16   : > { %2042 = vmatmul.mubr.msk.f32.gmra.mrb[2].mxu0 %vm233_vm1, %v2410_v12  ;;  %2092 = vmatmul.mubr.msk.f32.gmra.mrb[2].mxu1 %vm233_vm1, %v2410_v12  ;;  %v2556_v41 = vld [vmem:[%s2381_s6 + $0x90] sm:$0xff]  ;;  %v2573_v44 = vld [vmem:[%s2381_s6 + $0x98] sm:$0xff]  ;;  %v2576_v45 = vld [vmem:[%s2381_s6 + $0xa0] sm:$0xff] }
  0x17   : > { %2044 = vmatprep.mubr.msk.f32.mxu0 %vm233_vm1, %v2416_v13  ;;  %2094 = vmatprep.mubr.msk.f32.mxu1 %vm233_vm1, %v2416_v13  ;;  %v2593_v48 = vld [vmem:[%s2381_s6 + $0xa8] sm:$0xff]  ;;  %v2596_v49 = vld [vmem:[%s2381_s6 + $0xb0] sm:$0xff]  ;;  %v2613_v52 = vld [vmem:[%s2381_s6 + $0xb8] sm:$0xff] }
  0x18   : > { %v2616_v53 = vld [vmem:[%s2381_s6 + $0xc0] sm:$0xff]  ;;  %v2633_v56 = vld [vmem:[%s2381_s6 + $0xc8] sm:$0xff]  ;;  %v2636_v57 = vld [vmem:[%s2381_s6 + $0xd0] sm:$0xff] }
  0x19   : > { %1441 = vperm.xlu1 %2306, %v1379_v18   ;;  %1436 = vperm.xlu0 %2305, %v1378_v19   ;;  %v2653_v60 = vld [vmem:[%s2381_s6 + $0xd8] sm:$0xff]  ;;  %v2656_v61 = vld [vmem:[%s2381_s6 + $0xe0] sm:$0xff]  ;;  %v1401_v62 = vld [vmem:[%s3027_s3 + $0xe8] sm:$0xff] }
  0x1a   : > { %2045 = vmatmul.mubr.msk.f32.gmra.mrb[4].mxu0 %vm233_vm1, %v2433_v16  ;;  %2095 = vmatmul.mubr.msk.f32.gmra.mrb[4].mxu1 %vm233_vm1, %v2433_v16  ;;  %v1400_v63 = vld [vmem:[%s3027_s3 + $0xe0] sm:$0xff]  ;;  %v2673_v0 = vld [vmem:[%s2381_s6 + $0xe8] sm:$0xff]  ;;  %v2676_v1 = vld [vmem:[%s2381_s6 + $0xf0] sm:$0xff] }
  0x1b   : > { %2047 = vmatprep.mubr.msk.f32.mxu0 %vm233_vm1, %v2436_v17  ;;  %2097 = vmatprep.mubr.msk.f32.mxu1 %vm233_vm1, %v2436_v17  ;;  %v1403_v2 = vld [vmem:[%s3027_s3 + $0xf8] sm:$0xff]  ;;  %v1402_v3 = vld [vmem:[%s3027_s3 + $0xf0] sm:$0xff] }
  0x1c   : > { %v2693_v4 = vld [vmem:[%s2381_s6 + $0xf8] sm:$0xff] }
  0x1d   : > { %1451 = vperm.xlu1 %2306, %v1381_v22   ;;  %1446 = vperm.xlu0 %2305, %v1380_v23  }
  0x1e   : > { %2048 = vmatmul.mubr.msk.f32.gmra.mrb[6].mxu0 %vm233_vm1, %v2453_v20  ;;  %2098 = vmatmul.mubr.msk.f32.gmra.mrb[6].mxu1 %vm233_vm1, %v2453_v20 }
  0x1f   : > { %2050 = vmatprep.mubr.msk.f32.mxu0 %vm233_vm1, %v2456_v21  ;;  %2100 = vmatprep.mubr.msk.f32.mxu1 %vm233_vm1, %v2456_v21 }
  0x21   : > { %1461 = vperm.xlu1 %2306, %v1383_v26   ;;  %1456 = vperm.xlu0 %2305, %v1382_v27  }
  0x22   : > { %2051 = vmatmul.mubr.msk.f32.gmra.mrb[8].mxu0 %vm233_vm1, %v2473_v24  ;;  %2101 = vmatmul.mubr.msk.f32.gmra.mrb[8].mxu1 %vm233_vm1, %v2473_v24 }
  0x23   : > { %2053 = vmatprep.mubr.msk.f32.mxu0 %vm233_vm1, %v2476_v25  ;;  %2103 = vmatprep.mubr.msk.f32.mxu1 %vm233_vm1, %v2476_v25 }
  0x25   : > { %1471 = vperm.xlu1 %2306, %v1385_v30   ;;  %1466 = vperm.xlu0 %2305, %v1384_v31  }
  0x26   : > { %2054 = vmatmul.mubr.msk.f32.gmra.mrb[10].mxu0 %vm233_vm1, %v2493_v28  ;;  %2104 = vmatmul.mubr.msk.f32.gmra.mrb[10].mxu1 %vm233_vm1, %v2493_v28 }
  0x27   : > { %2056 = vmatprep.mubr.msk.f32.mxu0 %vm233_vm1, %v2496_v29  ;;  %2106 = vmatprep.mubr.msk.f32.mxu1 %vm233_vm1, %v2496_v29 }
  0x29   : > { %1481 = vperm.xlu1 %2306, %v1387_v34   ;;  %1476 = vperm.xlu0 %2305, %v1386_v35  }
  0x2a   : > { %2057 = vmatmul.mubr.msk.f32.gmra.mrb[12].mxu0 %vm233_vm1, %v2513_v32  ;;  %2107 = vmatmul.mubr.msk.f32.gmra.mrb[12].mxu1 %vm233_vm1, %v2513_v32 }
  0x2b   : > { %2059 = vmatprep.mubr.msk.f32.mxu0 %vm233_vm1, %v2516_v33  ;;  %2109 = vmatprep.mubr.msk.f32.mxu1 %vm233_vm1, %v2516_v33 }
  0x2d   : > { %1491 = vperm.xlu1 %2306, %v1389_v38   ;;  %1486 = vperm.xlu0 %2305, %v1388_v39  }
  0x2e   : > { %2060 = vmatmul.mubr.msk.f32.gmra.mrb[14].mxu0 %vm233_vm1, %v2533_v36  ;;  %2110 = vmatmul.mubr.msk.f32.gmra.mrb[14].mxu1 %vm233_vm1, %v2533_v36 }
  0x2f   : > { %2062 = vmatprep.mubr.msk.f32.mxu0 %vm233_vm1, %v2536_v37  ;;  %2112 = vmatprep.mubr.msk.f32.mxu1 %vm233_vm1, %v2536_v37 }
  0x31   : > { %1501 = vperm.xlu1 %2306, %v1391_v42   ;;  %1496 = vperm.xlu0 %2305, %v1390_v43  }
  0x32   : > { %2063 = vmatmul.mubr.msk.f32.gmra.mrb[16].mxu0 %vm233_vm1, %v2553_v40  ;;  %2113 = vmatmul.mubr.msk.f32.gmra.mrb[16].mxu1 %vm233_vm1, %v2553_v40 }
  0x33   : > { %2065 = vmatprep.mubr.msk.f32.mxu0 %vm233_vm1, %v2556_v41  ;;  %2115 = vmatprep.mubr.msk.f32.mxu1 %vm233_vm1, %v2556_v41 }
  0x35   : > { %1511 = vperm.xlu1 %2306, %v1393_v46   ;;  %1506 = vperm.xlu0 %2305, %v1392_v47  }
  0x36   : > { %2066 = vmatmul.mubr.msk.f32.gmra.mrb[18].mxu0 %vm233_vm1, %v2573_v44  ;;  %2116 = vmatmul.mubr.msk.f32.gmra.mrb[18].mxu1 %vm233_vm1, %v2573_v44 }
  0x37   : > { %2068 = vmatprep.mubr.msk.f32.mxu0 %vm233_vm1, %v2576_v45  ;;  %2118 = vmatprep.mubr.msk.f32.mxu1 %vm233_vm1, %v2576_v45 }
  0x39   : > { %1521 = vperm.xlu1 %2306, %v1395_v50   ;;  %1516 = vperm.xlu0 %2305, %v1394_v51  }
  0x3a   : > { %2069 = vmatmul.mubr.msk.f32.gmra.mrb[20].mxu0 %vm233_vm1, %v2593_v48  ;;  %2119 = vmatmul.mubr.msk.f32.gmra.mrb[20].mxu1 %vm233_vm1, %v2593_v48 }
  0x3b   : > { %2071 = vmatprep.mubr.msk.f32.mxu0 %vm233_vm1, %v2596_v49  ;;  %2121 = vmatprep.mubr.msk.f32.mxu1 %vm233_vm1, %v2596_v49 }
  0x3d   : > { %1531 = vperm.xlu1 %2306, %v1397_v54   ;;  %1526 = vperm.xlu0 %2305, %v1396_v55  }
  0x3e   : > { %2072 = vmatmul.mubr.msk.f32.gmra.mrb[22].mxu0 %vm233_vm1, %v2613_v52  ;;  %2122 = vmatmul.mubr.msk.f32.gmra.mrb[22].mxu1 %vm233_vm1, %v2613_v52 }
  0x3f   : > { %2074 = vmatprep.mubr.msk.f32.mxu0 %vm233_vm1, %v2616_v53  ;;  %2124 = vmatprep.mubr.msk.f32.mxu1 %vm233_vm1, %v2616_v53 }
  0x41   : > { %1541 = vperm.xlu1 %2306, %v1399_v58   ;;  %1536 = vperm.xlu0 %2305, %v1398_v59  }
  0x42   : > { %2075 = vmatmul.mubr.msk.f32.gmra.mrb[24].mxu0 %vm233_vm1, %v2633_v56  ;;  %2125 = vmatmul.mubr.msk.f32.gmra.mrb[24].mxu1 %vm233_vm1, %v2633_v56 }
  0x43   : > { %2077 = vmatprep.mubr.msk.f32.mxu0 %vm233_vm1, %v2636_v57  ;;  %2127 = vmatprep.mubr.msk.f32.mxu1 %vm233_vm1, %v2636_v57 }
  0x45   : > { %1551 = vperm.xlu1 %2306, %v1401_v62   ;;  %1546 = vperm.xlu0 %2305, %v1400_v63  }
  0x46   : > { %2078 = vmatmul.mubr.msk.f32.gmra.mrb[26].mxu0 %vm233_vm1, %v2653_v60  ;;  %2128 = vmatmul.mubr.msk.f32.gmra.mrb[26].mxu1 %vm233_vm1, %v2653_v60 }
  0x47   : > { %2080 = vmatprep.mubr.msk.f32.mxu0 %vm233_vm1, %v2656_v61  ;;  %2130 = vmatprep.mubr.msk.f32.mxu1 %vm233_vm1, %v2656_v61 }
  0x49   : > { %1561 = vperm.xlu1 %2306, %v1403_v2   ;;  %1556 = vperm.xlu0 %2305, %v1402_v3  }
  0x4a   : > { %2081 = vmatmul.mubr.msk.f32.gmra.mrb[28].mxu0 %vm233_vm1, %v2673_v0  ;;  %2131 = vmatmul.mubr.msk.f32.gmra.mrb[28].mxu1 %vm233_vm1, %v2673_v0 }
  0x4b   : > { %2083 = vmatprep.mubr.msk.f32.mxu0 %vm233_vm1, %v2676_v1  ;;  %2133 = vmatprep.mubr.msk.f32.mxu1 %vm233_vm1, %v2676_v1 }
  0x4e   : > { %2084 = vmatmul.mubr.msk.f32.gmra.mrb[30].mxu0 %vm233_vm1, %v2693_v4  ;;  %2134 = vmatmul.mubr.msk.f32.gmra.mrb[30].mxu1 %vm233_vm1, %v2693_v4 }
  0x4f   : > { %2138 = vmatprep.mubr.msk.f32.mxu0 %vm233_vm1, %v2384_v7  ;;  %2188 = vmatprep.mubr.msk.f32.mxu1 %vm233_vm1, %v2384_v7 }
  0x52   : > { %2139 = vmatmul.mubr.msk.f32.vlgmr.msra.gmra.mrb[32].mxu0 %vm233_vm1, %v2387_v8  ;;  %2189 = vmatmul.mubr.msk.f32.vlgmr.msra.gmra.mrb[32].mxu1 %vm233_vm1, %v2387_v8 }
  0x53   : > { %2141 = vmatprep.mubr.msk.f32.mxu0 %vm233_vm1, %v2390_v9  ;;  %2191 = vmatprep.mubr.msk.f32.mxu1 %vm233_vm1, %v2390_v9 }
  0x56   : > { %2142 = vmatmul.mubr.msk.f32.gmra.mrb[0].mxu0 %vm233_vm1, %v2410_v12  ;;  %2192 = vmatmul.mubr.msk.f32.gmra.mrb[0].mxu1 %vm233_vm1, %v2410_v12 }
  0x57   : > { %2144 = vmatprep.mubr.msk.f32.mxu0 %vm233_vm1, %v2416_v13  ;;  %2194 = vmatprep.mubr.msk.f32.mxu1 %vm233_vm1, %v2416_v13 }
  0x5a   : > { %2145 = vmatmul.mubr.msk.f32.gmra.mrb[2].mxu0 %vm233_vm1, %v2433_v16  ;;  %2195 = vmatmul.mubr.msk.f32.gmra.mrb[2].mxu1 %vm233_vm1, %v2433_v16 }
  0x5b   : > { %2147 = vmatprep.mubr.msk.f32.mxu0 %vm233_vm1, %v2436_v17  ;;  %2197 = vmatprep.mubr.msk.f32.mxu1 %vm233_vm1, %v2436_v17 }
  0x5e   : > { %2148 = vmatmul.mubr.msk.f32.gmra.mrb[4].mxu0 %vm233_vm1, %v2453_v20  ;;  %2198 = vmatmul.mubr.msk.f32.gmra.mrb[4].mxu1 %vm233_vm1, %v2453_v20 }
  0x5f   : > { %2150 = vmatprep.mubr.msk.f32.mxu0 %vm233_vm1, %v2456_v21  ;;  %2200 = vmatprep.mubr.msk.f32.mxu1 %vm233_vm1, %v2456_v21 }
  0x62   : > { %2151 = vmatmul.mubr.msk.f32.gmra.mrb[6].mxu0 %vm233_vm1, %v2473_v24  ;;  %2201 = vmatmul.mubr.msk.f32.gmra.mrb[6].mxu1 %vm233_vm1, %v2473_v24 }
  0x63   : > { %2153 = vmatprep.mubr.msk.f32.mxu0 %vm233_vm1, %v2476_v25  ;;  %2203 = vmatprep.mubr.msk.f32.mxu1 %vm233_vm1, %v2476_v25 }
  0x66   : > { %2154 = vmatmul.mubr.msk.f32.gmra.mrb[8].mxu0 %vm233_vm1, %v2493_v28  ;;  %2204 = vmatmul.mubr.msk.f32.gmra.mrb[8].mxu1 %vm233_vm1, %v2493_v28 }
  0x67   : > { %2156 = vmatprep.mubr.msk.f32.mxu0 %vm233_vm1, %v2496_v29  ;;  %2206 = vmatprep.mubr.msk.f32.mxu1 %vm233_vm1, %v2496_v29 }
  0x6a   : > { %2157 = vmatmul.mubr.msk.f32.gmra.mrb[10].mxu0 %vm233_vm1, %v2513_v32  ;;  %2207 = vmatmul.mubr.msk.f32.gmra.mrb[10].mxu1 %vm233_vm1, %v2513_v32 }
  0x6b   : > { %2159 = vmatprep.mubr.msk.f32.mxu0 %vm233_vm1, %v2516_v33  ;;  %2209 = vmatprep.mubr.msk.f32.mxu1 %vm233_vm1, %v2516_v33 }
  0x6e   : > { %2160 = vmatmul.mubr.msk.f32.gmra.mrb[12].mxu0 %vm233_vm1, %v2533_v36  ;;  %2210 = vmatmul.mubr.msk.f32.gmra.mrb[12].mxu1 %vm233_vm1, %v2533_v36 }
  0x6f   : > { %2162 = vmatprep.mubr.msk.f32.mxu0 %vm233_vm1, %v2536_v37  ;;  %2212 = vmatprep.mubr.msk.f32.mxu1 %vm233_vm1, %v2536_v37 }
  0x72   : > { %2163 = vmatmul.mubr.msk.f32.gmra.mrb[14].mxu0 %vm233_vm1, %v2553_v40  ;;  %2213 = vmatmul.mubr.msk.f32.gmra.mrb[14].mxu1 %vm233_vm1, %v2553_v40  ;;  %v2854_v40 = vld [vmem:[%s3026_s2] ss:$0 sm:$0xff] }
  0x73   : > { %2165 = vmatprep.mubr.msk.f32.mxu0 %vm233_vm1, %v2556_v41  ;;  %2215 = vmatprep.mubr.msk.f32.mxu1 %vm233_vm1, %v2556_v41 }
  0x76   : > { %2166 = vmatmul.mubr.msk.f32.gmra.mrb[16].mxu0 %vm233_vm1, %v2573_v44  ;;  %2216 = vmatmul.mubr.msk.f32.gmra.mrb[16].mxu1 %vm233_vm1, %v2573_v44 }
  0x77   : > { %2168 = vmatprep.mubr.msk.f32.mxu0 %vm233_vm1, %v2576_v45  ;;  %2218 = vmatprep.mubr.msk.f32.mxu1 %vm233_vm1, %v2576_v45 }
  0x7a   : > { %2169 = vmatmul.mubr.msk.f32.gmra.mrb[18].mxu0 %vm233_vm1, %v2593_v48  ;;  %2219 = vmatmul.mubr.msk.f32.gmra.mrb[18].mxu1 %vm233_vm1, %v2593_v48 }
  0x7b   : > { %2171 = vmatprep.mubr.msk.f32.mxu0 %vm233_vm1, %v2596_v49  ;;  %2221 = vmatprep.mubr.msk.f32.mxu1 %vm233_vm1, %v2596_v49 }
  0x7e   : > { %2172 = vmatmul.mubr.msk.f32.gmra.mrb[20].mxu0 %vm233_vm1, %v2613_v52  ;;  %2222 = vmatmul.mubr.msk.f32.gmra.mrb[20].mxu1 %vm233_vm1, %v2613_v52 }
  0x7f   : > { %2174 = vmatprep.mubr.msk.f32.mxu0 %vm233_vm1, %v2616_v53  ;;  %2224 = vmatprep.mubr.msk.f32.mxu1 %vm233_vm1, %v2616_v53 }
  0x82   : > { %2175 = vmatmul.mubr.msk.f32.gmra.mrb[22].mxu0 %vm233_vm1, %v2633_v56  ;;  %2225 = vmatmul.mubr.msk.f32.gmra.mrb[22].mxu1 %vm233_vm1, %v2633_v56 }
  0x83   : > { %2177 = vmatprep.mubr.msk.f32.mxu0 %vm233_vm1, %v2636_v57  ;;  %2227 = vmatprep.mubr.msk.f32.mxu1 %vm233_vm1, %v2636_v57 }
  0x86   : > { %2178 = vmatmul.mubr.msk.f32.gmra.mrb[24].mxu0 %vm233_vm1, %v2653_v60  ;;  %2228 = vmatmul.mubr.msk.f32.gmra.mrb[24].mxu1 %vm233_vm1, %v2653_v60 }
  0x87   : > { %2180 = vmatprep.mubr.msk.f32.mxu0 %vm233_vm1, %v2656_v61  ;;  %2230 = vmatprep.mubr.msk.f32.mxu1 %vm233_vm1, %v2656_v61 }
  0x89   : > { %v1417_v5 = vpop.permute.xlu1 %1416  ;;  %v1407_v6 = vpop.permute.xlu0 %1406 }
  0x8a   : > { %2181 = vmatmul.mubr.msk.f32.gmra.mrb[26].mxu0 %vm233_vm1, %v2673_v0  ;;  %2231 = vmatmul.mubr.msk.f32.gmra.mrb[26].mxu1 %vm233_vm1, %v2673_v0 }
  0x8b   : > { %2183 = vmatprep.mubr.msk.f32.mxu0 %vm233_vm1, %v2676_v1  ;;  %2233 = vmatprep.mubr.msk.f32.mxu1 %vm233_vm1, %v2676_v1 }
  0x8d   : > { %v1422_v7 = vpop.permute.xlu1 %1421  ;;  %v1412_v8 = vpop.permute.xlu0 %1411 }
  0x8e   : > { %2184 = vmatmul.mubr.msk.f32.gmra.mrb[28].mxu0 %vm233_vm1, %v2693_v4  ;;  %2234 = vmatmul.mubr.msk.f32.gmra.mrb[28].mxu1 %vm233_vm1, %v2693_v4 }
  0x94   : > { %v2827_v9 = vpop.permute.xlu1 %1431  ;;  %v1427_v10 = vpop.permute.xlu0 %1426 }
  0x98   : > { %v2829_v11 = vpop.permute.xlu1 %1441  ;;  %v2831_v12 = vpop.permute.xlu0 %1436 }
  0x9c   : > { %v2833_v13 = vpop.permute.xlu1 %1451  ;;  %v2835_v14 = vpop.permute.xlu0 %1446 }
  0xa0   : > { %v2837_v15 = vpop.permute.xlu1 %1461  ;;  %v2839_v16 = vpop.permute.xlu0 %1456 }
  0xa4   : > { %v2841_v17 = vpop.permute.xlu1 %1471  ;;  %v2843_v18 = vpop.permute.xlu0 %1466 }
  0xa8   : > { %v2845_v29 = vpop.permute.xlu1 %1481  ;;  %v2847_v30 = vpop.permute.xlu0 %1476 }
  0xac   : > { %v2867_v56 = vpop.permute.xlu1 %1491  ;;  %v2869_v57 = vpop.permute.xlu0 %1486 }
 0x121   : > { %v2135_v19 = vpop.f32.mrb[30].mxu1  ;;  %v2085_v20 = vpop.f32.mrb[30].mxu0 }
 0x122   : > { %v780_v21 = vpop.f32.mrb[31].mxu1  ;;  %v550_v22 = vpop.f32.mrb[31].mxu0 }
 0x125   : > { %v2190_v23 = vpop.f32.mrb[32].mxu1  ;;  %v2140_v24 = vpop.f32.mrb[32].mxu0 }
 0x126   : > { %v1277_v25 = vrot.slane %v2190_v23, 7  ;;  %v1084_v26 = vpop.f32.mrb[33].mxu1  ;;  %v856_v27 = vpop.f32.mrb[33].mxu0 }
 0x127   : > { %v1276_v28 = vrot.slane %v1084_v26, 7 }
 0x129   : > { %v1371_v31 = vsel %vm1275_vm2, 0.0, %v1276_v28  ;;  %v1278_v32 = vsel %vm1275_vm2, %v1276_v28, %v1277_v25  ;;  %v2143_v33 = vpop.f32.mrb[0].mxu0  ;;  %v2193_v34 = vpop.f32.mrb[0].mxu1 }
 0x12a   : > { %v1565_v35 = vmul.f32 %v1412_v8, %v1278_v32  ;;  %v1564_v36 = vmul.f32 %v1407_v6, %v1371_v31  ;;  %v1281_v37 = vrot.slane %v2193_v34, 7  ;;  %v866_v38 = vpop.f32.mrb[1].mxu0  ;;  %v1094_v39 = vpop.f32.mrb[1].mxu1 }
 0x12b   : > { %v1279_v41 = vrot.slane %v1094_v39, 7  ;;  %v2890_v32 = vpop.permute.xlu1 %1501 }
 0x12c   : > { %v1597_v42 = vadd.f32 %v2140_v24, %v1565_v35  ;;  %v1596_v43 = vadd.f32 %v1564_v36, %v856_v27 }
 0x12d   : > { %v1280_v44 = vsel %vm1275_vm2, %v1277_v25, %v1279_v41  ;;  %v1282_v45 = vsel %vm1275_vm2, %v1279_v41, %v1281_v37  ;;  %v2146_v46 = vpop.f32.mrb[2].mxu0  ;;  %v2196_v47 = vpop.f32.mrb[2].mxu1 }
 0x12e   : > { %v1636_v48 = vadd.f32 %v2854_v40, %v1597_v42  ;;  %v1635_v49 = vadd.f32 %v2854_v40, %v1596_v43  ;;  %v1566_v50 = vmul.f32 %v1417_v5, %v1280_v44  ;;  %v1567_v51 = vmul.f32 %v1422_v7, %v1282_v45  ;;  %v876_v52 = vpop.f32.mrb[3].mxu0  ;;  %v1104_v53 = vpop.f32.mrb[3].mxu1 }
 0x12f   : > { %v1285_v54 = vrot.slane %v2196_v47, 7  ;;  %v1283_v55 = vrot.slane %v1104_v53, 7 }
 0x130   : > { %1669 = vst.msk [vmem:[%s2861_s28 + $0x8] sm:$0xff] %vm1667_vm3, %v1636_v48  ;;  %1668 = vst.msk [vmem:[%s2861_s28] sm:$0xff] %vm1667_vm3, %v1635_v49  ;;  %v1598_v58 = vadd.f32 %v1566_v50, %v866_v38  ;;  %v1599_v59 = vadd.f32 %v2143_v33, %v1567_v51  ;;  %v2892_v33 = vpop.permute.xlu0 %1496 }
 0x131   : > { %v1284_v60 = vsel %vm1275_vm2, %v1281_v37, %v1283_v55  ;;  %v1286_v61 = vsel %vm1275_vm2, %v1283_v55, %v1285_v54  ;;  %v2149_v62 = vpop.f32.mrb[4].mxu0  ;;  %v2199_v63 = vpop.f32.mrb[4].mxu1 }
 0x132   : > { %v1637_v0 = vadd.f32 %v2854_v40, %v1598_v58  ;;  %v1638_v1 = vadd.f32 %v2854_v40, %v1599_v59  ;;  %v1568_v2 = vmul.f32 %v1427_v10, %v1284_v60  ;;  %v1569_v3 = vmul.f32 %v2827_v9, %v1286_v61  ;;  %v886_v4 = vpop.f32.mrb[5].mxu0  ;;  %v1114_v5 = vpop.f32.mrb[5].mxu1 }
 0x133   : > { %v1289_v6 = vrot.slane %v2199_v63, 7  ;;  %v1287_v7 = vrot.slane %v1114_v5, 7  ;;  %v2914_v61 = vpop.permute.xlu1 %1511 }
 0x134   : > { %1670 = vst.msk [vmem:[%s2861_s28 + $0x10] sm:$0xff] %vm1667_vm3, %v1637_v0  ;;  %1671 = vst.msk [vmem:[%s2861_s28 + $0x18] sm:$0xff] %vm1667_vm3, %v1638_v1  ;;  %v1600_v8 = vadd.f32 %v1568_v2, %v876_v52  ;;  %v1601_v19 = vadd.f32 %v2146_v46, %v1569_v3 }
 0x135   : > { %v1288_v20 = vsel %vm1275_vm2, %v1285_v54, %v1287_v7  ;;  %v1290_v21 = vsel %vm1275_vm2, %v1287_v7, %v1289_v6  ;;  %v2152_v22 = vpop.f32.mrb[6].mxu0  ;;  %v2202_v10 = vpop.f32.mrb[6].mxu1 }
 0x136   : > { %v1639_v9 = vadd.f32 %v2854_v40, %v1600_v8  ;;  %v1640_v23 = vadd.f32 %v2854_v40, %v1601_v19  ;;  %v1570_v24 = vmul.f32 %v2831_v12, %v1288_v20  ;;  %v1571_v25 = vmul.f32 %v2829_v11, %v1290_v21  ;;  %v896_v26 = vpop.f32.mrb[7].mxu0  ;;  %v1124_v27 = vpop.f32.mrb[7].mxu1 }
 0x137   : > { %v1293_v28 = vrot.slane %v2202_v10, 7  ;;  %v1291_v31 = vrot.slane %v1124_v27, 7 }
 0x138   : > { %1672 = vst.msk [vmem:[%s2861_s28 + $0x20] sm:$0xff] %vm1667_vm3, %v1639_v9  ;;  %1673 = vst.msk [vmem:[%s2861_s28 + $0x28] sm:$0xff] %vm1667_vm3, %v1640_v23  ;;  %v1602_v34 = vadd.f32 %v1570_v24, %v886_v4  ;;  %v1603_v35 = vadd.f32 %v2149_v62, %v1571_v25  ;;  %v2916_v62 = vpop.permute.xlu0 %1506 }
 0x139   : > { %v1292_v12 = vsel %vm1275_vm2, %v1289_v6, %v1291_v31  ;;  %v1294_v11 = vsel %vm1275_vm2, %v1291_v31, %v1293_v28  ;;  %v2155_v36 = vpop.f32.mrb[8].mxu0  ;;  %v2205_v37 = vpop.f32.mrb[8].mxu1 }
 0x13a   : > { %v1641_v38 = vadd.f32 %v2854_v40, %v1602_v34  ;;  %v1642_v39 = vadd.f32 %v2854_v40, %v1603_v35  ;;  %v1572_v41 = vmul.f32 %v2835_v14, %v1292_v12  ;;  %v1573_v42 = vmul.f32 %v2833_v13, %v1294_v11  ;;  %v906_v43 = vpop.f32.mrb[9].mxu0  ;;  %v1134_v44 = vpop.f32.mrb[9].mxu1 }
 0x13b   : > { %v1297_v45 = vrot.slane %v2205_v37, 7  ;;  %v1295_v46 = vrot.slane %v1134_v44, 7  ;;  %v2938_v35 = vpop.permute.xlu1 %1521 }
 0x13c   : > { %1674 = vst.msk [vmem:[%s2861_s28 + $0x30] sm:$0xff] %vm1667_vm3, %v1641_v38  ;;  %1675 = vst.msk [vmem:[%s2861_s28 + $0x38] sm:$0xff] %vm1667_vm3, %v1642_v39  ;;  %v1604_v47 = vadd.f32 %v1572_v41, %v896_v26  ;;  %v1605_v48 = vadd.f32 %v2152_v22, %v1573_v42  ;;  %v1517_v12 = vpop.permute.xlu0 %1516 }
 0x13d   : > { %v1296_v49 = vsel %vm1275_vm2, %v1293_v28, %v1295_v46  ;;  %v1298_v50 = vsel %vm1275_vm2, %v1295_v46, %v1297_v45  ;;  %v2158_v51 = vpop.f32.mrb[10].mxu0  ;;  %v2208_v14 = vpop.f32.mrb[10].mxu1 }
 0x13e   : > { %v1643_v13 = vadd.f32 %v2854_v40, %v1604_v47  ;;  %v1644_v52 = vadd.f32 %v2854_v40, %v1605_v48  ;;  %v1574_v53 = vmul.f32 %v2839_v16, %v1296_v49  ;;  %v1575_v54 = vmul.f32 %v2837_v15, %v1298_v50  ;;  %v916_v55 = vpop.f32.mrb[11].mxu0  ;;  %v1144_v58 = vpop.f32.mrb[11].mxu1 }
 0x13f   : > { %v1301_v59 = vrot.slane %v2208_v14, 7  ;;  %v1299_v60 = vrot.slane %v1144_v58, 7 }
 0x140   : > { %1676 = vst.msk [vmem:[%s2861_s28 + $0x40] sm:$0xff] %vm1667_vm3, %v1643_v13  ;;  %1677 = vst.msk [vmem:[%s2861_s28 + $0x48] sm:$0xff] %vm1667_vm3, %v1644_v52  ;;  %v1606_v63 = vadd.f32 %v1574_v53, %v906_v43  ;;  %v1607_v0 = vadd.f32 %v2155_v36, %v1575_v54 }
 0x141   : > { %v1300_v16 = vsel %vm1275_vm2, %v1297_v45, %v1299_v60  ;;  %v1302_v15 = vsel %vm1275_vm2, %v1299_v60, %v1301_v59  ;;  %v2161_v1 = vpop.f32.mrb[12].mxu0  ;;  %v2211_v2 = vpop.f32.mrb[12].mxu1 }
 0x142   : > { %v1645_v3 = vadd.f32 %v2854_v40, %v1606_v63  ;;  %v1646_v4 = vadd.f32 %v2854_v40, %v1607_v0  ;;  %v1576_v5 = vmul.f32 %v2843_v18, %v1300_v16  ;;  %v1577_v6 = vmul.f32 %v2841_v17, %v1302_v15  ;;  %v926_v7 = vpop.f32.mrb[13].mxu0  ;;  %v1154_v8 = vpop.f32.mrb[13].mxu1 }
 0x143   : > { %v1305_v19 = vrot.slane %v2211_v2, 7  ;;  %v1303_v20 = vrot.slane %v1154_v8, 7  ;;  %v1532_v60 = vpop.permute.xlu1 %1531  ;;  %v1527_v63 = vpop.permute.xlu0 %1526 }
 0x144   : > { %1678 = vst.msk [vmem:[%s2861_s28 + $0x50] sm:$0xff] %vm1667_vm3, %v1645_v3  ;;  %1679 = vst.msk [vmem:[%s2861_s28 + $0x58] sm:$0xff] %vm1667_vm3, %v1646_v4  ;;  %v1608_v21 = vadd.f32 %v1576_v5, %v916_v55  ;;  %v1609_v22 = vadd.f32 %v2158_v51, %v1577_v6 }
 0x145   : > { %v1304_v10 = vsel %vm1275_vm2, %v1301_v59, %v1303_v20  ;;  %v1306_v9 = vsel %vm1275_vm2, %v1303_v20, %v1305_v19  ;;  %v2164_v23 = vpop.f32.mrb[14].mxu0  ;;  %v2214_v18 = vpop.f32.mrb[14].mxu1 }
 0x146   : > { %v1647_v17 = vadd.f32 %v2854_v40, %v1608_v21  ;;  %v1648_v24 = vadd.f32 %v2854_v40, %v1609_v22  ;;  %v1578_v25 = vmul.f32 %v2847_v30, %v1304_v10  ;;  %v1579_v26 = vmul.f32 %v2845_v29, %v1306_v9  ;;  %v936_v27 = vpop.f32.mrb[15].mxu0  ;;  %v1164_v28 = vpop.f32.mrb[15].mxu1 }
 0x147   : > { %v1309_v31 = vrot.slane %v2214_v18, 7  ;;  %v1307_v34 = vrot.slane %v1164_v28, 7  ;;  %v1542_v28 = vpop.permute.xlu1 %1541 }
 0x148   : > { %1680 = vst.msk [vmem:[%s2861_s28 + $0x60] sm:$0xff] %vm1667_vm3, %v1647_v17  ;;  %1681 = vst.msk [vmem:[%s2861_s28 + $0x68] sm:$0xff] %vm1667_vm3, %v1648_v24  ;;  %v1610_v11 = vadd.f32 %v1578_v25, %v926_v7  ;;  %v1611_v36 = vadd.f32 %v2161_v1, %v1579_v26 }
 0x149   : > { %v1308_v37 = vsel %vm1275_vm2, %v1305_v19, %v1307_v34  ;;  %v1310_v30 = vsel %vm1275_vm2, %v1307_v34, %v1309_v31  ;;  %v2167_v29 = vpop.f32.mrb[16].mxu0  ;;  %v2217_v38 = vpop.f32.mrb[16].mxu1 }
 0x14a   : > { %v1649_v39 = vadd.f32 %v2854_v40, %v1610_v11  ;;  %v1650_v41 = vadd.f32 %v2854_v40, %v1611_v36  ;;  %v1580_v42 = vmul.f32 %v2869_v57, %v1308_v37  ;;  %v1581_v43 = vmul.f32 %v2867_v56, %v1310_v30  ;;  %v946_v44 = vpop.f32.mrb[17].mxu0  ;;  %v1174_v45 = vpop.f32.mrb[17].mxu1 }
 0x14b   : > { %v1313_v46 = vrot.slane %v2217_v38, 7  ;;  %v1311_v47 = vrot.slane %v1174_v45, 7 }
 0x14c   : > { %1682 = vst.msk [vmem:[%s2861_s28 + $0x70] sm:$0xff] %vm1667_vm3, %v1649_v39  ;;  %1683 = vst.msk [vmem:[%s2861_s28 + $0x78] sm:$0xff] %vm1667_vm3, %v1650_v41  ;;  %v1612_v48 = vadd.f32 %v1580_v42, %v936_v27  ;;  %v1613_v49 = vadd.f32 %v2164_v23, %v1581_v43 }
 0x14d   : > { %v1312_v50 = vsel %vm1275_vm2, %v1309_v31, %v1311_v47  ;;  %v1314_v51 = vsel %vm1275_vm2, %v1311_v47, %v1313_v46  ;;  %v2170_v14 = vpop.f32.mrb[18].mxu0  ;;  %v2220_v57 = vpop.f32.mrb[18].mxu1 }
 0x14e   : > { %v1651_v56 = vadd.f32 %v2854_v40, %v1612_v48  ;;  %v1652_v13 = vadd.f32 %v2854_v40, %v1613_v49  ;;  %v1582_v52 = vmul.f32 %v2892_v33, %v1312_v50  ;;  %v1583_v53 = vmul.f32 %v2890_v32, %v1314_v51  ;;  %v956_v54 = vpop.f32.mrb[19].mxu0  ;;  %v1184_v55 = vpop.f32.mrb[19].mxu1 }
 0x14f   : > { %v1317_v58 = vrot.slane %v2220_v57, 7  ;;  %v1315_v59 = vrot.slane %v1184_v55, 7  ;;  %v1537_v31 = vpop.permute.xlu0 %1536 }
 0x150   : > { %1684 = vst.msk [vmem:[%s2861_s28 + $0x80] sm:$0xff] %vm1667_vm3, %v1651_v56  ;;  %1685 = vst.msk [vmem:[%s2861_s28 + $0x88] sm:$0xff] %vm1667_vm3, %v1652_v13  ;;  %v1614_v0 = vadd.f32 %v1582_v52, %v946_v44  ;;  %v1615_v16 = vadd.f32 %v2167_v29, %v1583_v53  ;;  %v1552_v53 = vpop.permute.xlu1 %1551 }
 0x151   : > { %v1316_v15 = vsel %vm1275_vm2, %v1313_v46, %v1315_v59  ;;  %v1318_v33 = vsel %vm1275_vm2, %v1315_v59, %v1317_v58  ;;  %v2173_v1 = vpop.f32.mrb[20].mxu0  ;;  %v2223_v32 = vpop.f32.mrb[20].mxu1 }
 0x152   : > { %v1653_v2 = vadd.f32 %v2854_v40, %v1614_v0  ;;  %v1654_v3 = vadd.f32 %v2854_v40, %v1615_v16  ;;  %v1584_v4 = vmul.f32 %v2916_v62, %v1316_v15  ;;  %v1585_v5 = vmul.f32 %v2914_v61, %v1318_v33  ;;  %v966_v6 = vpop.f32.mrb[21].mxu0  ;;  %v1194_v7 = vpop.f32.mrb[21].mxu1 }
 0x153   : > { %v1321_v8 = vrot.slane %v2223_v32, 7  ;;  %v1319_v19 = vrot.slane %v1194_v7, 7 }
 0x154   : > { %1686 = vst.msk [vmem:[%s2861_s28 + $0x90] sm:$0xff] %vm1667_vm3, %v1653_v2  ;;  %1687 = vst.msk [vmem:[%s2861_s28 + $0x98] sm:$0xff] %vm1667_vm3, %v1654_v3  ;;  %v1616_v20 = vadd.f32 %v1584_v4, %v956_v54  ;;  %v1617_v21 = vadd.f32 %v2170_v14, %v1585_v5  ;;  %v1547_v54 = vpop.permute.xlu0 %1546 }
 0x155   : > { %v1320_v22 = vsel %vm1275_vm2, %v1317_v58, %v1319_v19  ;;  %v1322_v10 = vsel %vm1275_vm2, %v1319_v19, %v1321_v8  ;;  %v2176_v9 = vpop.f32.mrb[22].mxu0  ;;  %v2226_v62 = vpop.f32.mrb[22].mxu1 }
 0x156   : > { %v1655_v61 = vadd.f32 %v2854_v40, %v1616_v20  ;;  %v1656_v23 = vadd.f32 %v2854_v40, %v1617_v21  ;;  %v1586_v18 = vmul.f32 %v1517_v12, %v1320_v22  ;;  %v1587_v17 = vmul.f32 %v2938_v35, %v1322_v10  ;;  %v976_v24 = vpop.f32.mrb[23].mxu0  ;;  %v1204_v25 = vpop.f32.mrb[23].mxu1 }
 0x157   : > { %v1325_v26 = vrot.slane %v2226_v62, 7  ;;  %v1323_v27 = vrot.slane %v1204_v25, 7  ;;  %v1562_v19 = vpop.permute.xlu1 %1561 }
 0x158   : > { %1688 = vst.msk [vmem:[%s2861_s28 + $0xa0] sm:$0xff] %vm1667_vm3, %v1655_v61  ;;  %1689 = vst.msk [vmem:[%s2861_s28 + $0xa8] sm:$0xff] %vm1667_vm3, %v1656_v23  ;;  %v1618_v34 = vadd.f32 %v1586_v18, %v966_v6  ;;  %v1619_v11 = vadd.f32 %v2173_v1, %v1587_v17  ;;  %v1557_v20 = vpop.permute.xlu0 %1556 }
 0x159   : > { %v1324_v36 = vsel %vm1275_vm2, %v1321_v8, %v1323_v27  ;;  %v1326_v12 = vsel %vm1275_vm2, %v1323_v27, %v1325_v26  ;;  %v2179_v37 = vpop.f32.mrb[24].mxu0  ;;  %v2229_v35 = vpop.f32.mrb[24].mxu1 }
 0x15a   : > { %v1657_v30 = vadd.f32 %v2854_v40, %v1618_v34  ;;  %v1658_v29 = vadd.f32 %v2854_v40, %v1619_v11  ;;  %v1588_v38 = vmul.f32 %v1527_v63, %v1324_v36  ;;  %v1589_v39 = vmul.f32 %v1532_v60, %v1326_v12  ;;  %v986_v41 = vpop.f32.mrb[25].mxu0  ;;  %v1214_v42 = vpop.f32.mrb[25].mxu1 }
 0x15b   : > { %v1329_v43 = vrot.slane %v2229_v35, 7  ;;  %v1327_v44 = vrot.slane %v1214_v42, 7 }
 0x15c   : > { %1690 = vst.msk [vmem:[%s2861_s28 + $0xb0] sm:$0xff] %vm1667_vm3, %v1657_v30  ;;  %1691 = vst.msk [vmem:[%s2861_s28 + $0xb8] sm:$0xff] %vm1667_vm3, %v1658_v29  ;;  %v1620_v45 = vadd.f32 %v1588_v38, %v976_v24  ;;  %v1621_v46 = vadd.f32 %v2176_v9, %v1589_v39 }
 0x15d   : > { %v1328_v47 = vsel %vm1275_vm2, %v1325_v26, %v1327_v44  ;;  %v1330_v48 = vsel %vm1275_vm2, %v1327_v44, %v1329_v43  ;;  %v2182_v49 = vpop.f32.mrb[26].mxu0  ;;  %v2232_v50 = vpop.f32.mrb[26].mxu1 }
 0x15e   : > { %v1659_v51 = vadd.f32 %v2854_v40, %v1620_v45  ;;  %v1660_v14 = vadd.f32 %v2854_v40, %v1621_v46  ;;  %v1590_v57 = vmul.f32 %v1537_v31, %v1328_v47  ;;  %v1591_v56 = vmul.f32 %v1542_v28, %v1330_v48  ;;  %v996_v13 = vpop.f32.mrb[27].mxu0  ;;  %v1224_v52 = vpop.f32.mrb[27].mxu1 }
 0x15f   : > { %v1333_v55 = vrot.slane %v2232_v50, 7  ;;  %v1331_v58 = vrot.slane %v1224_v52, 7 }
 0x160   : > { %1692 = vst.msk [vmem:[%s2861_s28 + $0xc0] sm:$0xff] %vm1667_vm3, %v1659_v51  ;;  %1693 = vst.msk [vmem:[%s2861_s28 + $0xc8] sm:$0xff] %vm1667_vm3, %v1660_v14  ;;  %v1622_v59 = vadd.f32 %v1590_v57, %v986_v41  ;;  %v1623_v60 = vadd.f32 %v2179_v37, %v1591_v56 }
 0x161   : > { %v1332_v63 = vsel %vm1275_vm2, %v1329_v43, %v1331_v58  ;;  %v1334_v0 = vsel %vm1275_vm2, %v1331_v58, %v1333_v55  ;;  %v2185_v16 = vpop.f32.mrb[28].mxu0  ;;  %v2235_v15 = vpop.f32.mrb[28].mxu1 }
 0x162   : > { %v1661_v33 = vadd.f32 %v2854_v40, %v1622_v59  ;;  %v1662_v1 = vadd.f32 %v2854_v40, %v1623_v60  ;;  %v1592_v32 = vmul.f32 %v1547_v54, %v1332_v63  ;;  %v1593_v2 = vmul.f32 %v1552_v53, %v1334_v0  ;;  %v1006_v3 = vpop.f32.mrb[29].mxu0  ;;  %v1234_v4 = vpop.f32.mrb[29].mxu1 }
 0x163   : > { %v1337_v5 = vrot.slane %v2235_v15, 7  ;;  %v1335_v6 = vrot.slane %v1234_v4, 7 }
 0x164   : > { %1694 = vst.msk [vmem:[%s2861_s28 + $0xd0] sm:$0xff] %vm1667_vm3, %v1661_v33  ;;  %1695 = vst.msk [vmem:[%s2861_s28 + $0xd8] sm:$0xff] %vm1667_vm3, %v1662_v1  ;;  %v1624_v7 = vadd.f32 %v1592_v32, %v996_v13  ;;  %v1625_v8 = vadd.f32 %v2182_v49, %v1593_v2 }
 0x165   : > { %v1336_v21 = vsel %vm1275_vm2, %v1333_v55, %v1335_v6  ;;  %v1338_v22 = vsel %vm1275_vm2, %v1335_v6, %v1337_v5 }
 0x166   : > { %v1663_v10 = vadd.f32 %v2854_v40, %v1624_v7  ;;  %v1664_v9 = vadd.f32 %v2854_v40, %v1625_v8  ;;  %v1594_v62 = vmul.f32 %v1557_v20, %v1336_v21  ;;  %v1595_v61 = vmul.f32 %v1562_v19, %v1338_v22 }
 0x168   : > { %1696 = vst.msk [vmem:[%s2861_s28 + $0xe0] sm:$0xff] %vm1667_vm3, %v1663_v10  ;;  %1697 = vst.msk [vmem:[%s2861_s28 + $0xe8] sm:$0xff] %vm1667_vm3, %v1664_v9  ;;  %v1626_v23 = vadd.f32 %v1594_v62, %v1006_v3  ;;  %v1627_v18 = vadd.f32 %v2185_v16, %v1595_v61 }
 0x16a   : > { %v1665_v17 = vadd.f32 %v2854_v40, %v1626_v23  ;;  %v1666_v24 = vadd.f32 %v2854_v40, %v1627_v18 }
 0x16c   : > { %1698 = vst.msk [vmem:[%s2861_s28 + $0xf0] sm:$0xff] %vm1667_vm3, %v1665_v17  ;;  %1699 = vst.msk [vmem:[%s2861_s28 + $0xf8] sm:$0xff] %vm1667_vm3, %v1666_v24 }
 0x16d PF: > { %s14_s15 = sadd.s32 1, %s2313_s15  }
 0x16e   : > { %p11_p4 = scmp.ge.s32.totalorder %s14_s15, 4  }
 0x170   :  { %13 = sbr.rel (!%p11_p4) target bundleno = 1 (0x1), region = 69 }

</bundles_post_ra>
